<compile_context>
chip_gen: v6e
topology: v6e:2x2x1
jax: 0.10.0
libtpu: 0.0.40
codegen_flags: <defaults>
</compile_context>

<pallas_src>
import jax
import jax.numpy as jnp
from jax.experimental import pallas as pl
from jax.experimental.pallas import tpu as pltpu


# ------------- elementwise math (shared by the kernels and the jnp tail path) -------------

def _scalar_math(other, x, out_dtype):
    # out = other - x*x    (torch.rsub(tensor*tensor, other.item()))
    x = x.astype(out_dtype)
    return other.astype(out_dtype) - x * x


def _tensor_math(x, y, out_dtype):
    # third = y - x ; out = third - third (kept explicit so NaN/Inf propagate like PyTorch)
    third = y.astype(out_dtype) - x.astype(out_dtype)
    return third - third


def _tensor_scalar_math(s, x, out_dtype):
    # tensor branch where one operand has a single element; the sign of `third` does not
    # change third - third (identical 0 / NaN pattern), so one function serves both sides.
    third = s.astype(out_dtype) - x.astype(out_dtype)
    return third - third


# ---------------- kernels ----------------

def _rsub_scalar_kernel(other_ref, x_ref, o_ref):
    o_ref[...] = _scalar_math(other_ref[0], x_ref[...], o_ref.dtype)


def _rsub_tensor_kernel(x_ref, y_ref, o_ref):
    o_ref[...] = _tensor_math(x_ref[...], y_ref[...], o_ref.dtype)


def _rsub_tensor_scalar_kernel(s_ref, x_ref, o_ref):
    o_ref[...] = _tensor_scalar_math(s_ref[0], x_ref[...], o_ref.dtype)


# ---------------- per-generation tiling config ----------------

_MIN_LANES = 128
_SUBLANE_BY_ITEMSIZE = {1: 32, 2: 16, 4: 8, 8: 8}


def _tile_config():
    """(per-operand tile bytes, vmem_limit_bytes or None) for the local TPU generation."""
    try:
        kind = jax.devices()[0].device_kind.lower()
    except Exception:
        kind = ""
    if "v7" in kind or "7x" in kind:
        # 3 operands x 2 buffers x 4 MiB = 24 MiB < v7x's 32 MiB scoped-VMEM default.
        return 4 * 1024 * 1024, None
    if "v6" in kind or "v5" in kind:
        # 3 x 2 x 8 MiB = 48 MiB -> raise the scoped-VMEM limit (physical VMEM is 128 MiB).
        return 8 * 1024 * 1024, 64 * 1024 * 1024
    # unknown / older chips: conservative tiles that fit a 16 MiB scoped-VMEM default.
    return 2 * 1024 * 1024, None


_TARGET_TILE_BYTES, _VMEM_LIMIT = _tile_config()
# Any slab that fits in a single tile takes the no-grid fast path (kept aligned with the
# tile size so mid-size slabs never become a 2-step grid with a ragged trailing block).
_SMALL_SLAB_BYTES = _TARGET_TILE_BYTES


# ---------------- layout helpers ----------------

def _pick_lanes(n):
    """Widest lane-dense last dim (multiple of 128) that divides n; else 128."""
    for lanes in (1024, 512, 256, 128):
        if n % lanes == 0:
            return lanes
    return _MIN_LANES


def _row_tile(rows, lanes, dtypes):
    """Sublane-aligned row tile: ~_TARGET_TILE_BYTES per operand, capped so the grid
    always has >= 2 steps (keeps both v7x TensorCores busy)."""
    min_item = min(jnp.dtype(d).itemsize for d in dtypes)
    max_item = max(jnp.dtype(d).itemsize for d in dtypes)
    sub = _SUBLANE_BY_ITEMSIZE.get(min_item, 8)
    target = max(sub, (_TARGET_TILE_BYTES // (lanes * max_item)) // sub * sub)
    half = (rows // 2) // sub * sub
    rt = min(target, half) if half >= sub else target
    return max(sub, min(rt, rows))


def _smem_scalar(val):
    """32-bit SMEM-friendly (1,)-shaped scalar; the kernel casts to the output dtype."""
    dt = jnp.float32 if jnp.issubdtype(val.dtype, jnp.floating) else jnp.int32
    return jnp.asarray(val).reshape(1).astype(dt)


# ---------------- pallas_call wrappers ----------------

def _single_block_call(kernel, out_dtype, arrays2d, scalars=()):
    """One full-array block, no grid / pipeline overhead (block == full dims, so no
    (8,128) constraint even for ragged shapes)."""
    shape = arrays2d[0].shape
    scalar_specs = [pl.BlockSpec(memory_space=pltpu.MemorySpace.SMEM) for _ in scalars]
    specs = [pl.BlockSpec(shape, lambda: (0, 0)) for _ in arrays2d]
    return pl.pallas_call(
        kernel,
        out_shape=jax.ShapeDtypeStruct(shape, out_dtype),
        in_specs=scalar_specs + specs,
        out_specs=pl.BlockSpec(shape, lambda: (0, 0)),
        compiler_params=pltpu.CompilerParams(vmem_limit_bytes=_VMEM_LIMIT),
    )(*scalars, *arrays2d)


def _slab_call(kernel, out_dtype, slabs, scalars=()):
    """Elementwise kernel over equally shaped (rows, lanes) slabs."""
    rows, lanes = slabs[0].shape
    dtypes = [s.dtype for s in slabs] + [out_dtype]
    max_item = max(jnp.dtype(d).itemsize for d in dtypes)
    slab_bytes = rows * lanes * max_item

    if slab_bytes <= _SMALL_SLAB_BYTES:
        return _single_block_call(kernel, out_dtype, slabs, scalars)

    # Large slabs: 1-D grid over rows, double-buffered streaming, >= 2 parallel steps.
    rt = _row_tile(rows, lanes, dtypes)
    grid = (pl.cdiv(rows, rt),)
    scalar_specs = [pl.BlockSpec(memory_space=pltpu.MemorySpace.SMEM) for _ in scalars]
    specs = [pl.BlockSpec((rt, lanes), lambda i: (i, 0)) for _ in slabs]
    return pl.pallas_call(
        kernel,
        out_shape=jax.ShapeDtypeStruct((rows, lanes), out_dtype),
        grid=grid,
        in_specs=scalar_specs + specs,
        out_specs=pl.BlockSpec((rt, lanes), lambda i: (i, 0)),
        compiler_params=pltpu.CompilerParams(
            dimension_semantics=("parallel",),     # shards steps across v7x's 2 TCs
            vmem_limit_bytes=_VMEM_LIMIT),
    )(*scalars, *slabs)


def _run_elementwise(kernel, math_fn, out_dtype, arrays, scalars=()):
    """Run an elementwise kernel over same-shaped arrays (+ optional SMEM scalars).
    Returns an array with arrays[0].shape and dtype out_dtype."""
    shape = arrays[0].shape
    n = int(arrays[0].size)
    if n == 0:
        return jnp.zeros(shape, out_dtype)

    dtypes = [a.dtype for a in arrays] + [out_dtype]
    max_item = max(jnp.dtype(d).itemsize for d in dtypes)
    lanes = _pick_lanes(n)

    if n % lanes == 0:
        # Lane-dense slab via a free contiguous reshape (no pad / slice round trip).
        slabs = [a.reshape(n // lanes, lanes) for a in arrays]
        out = _slab_call(kernel, out_dtype, slabs, scalars)
        return out.reshape(shape)

    if n * max_item <= _SMALL_SLAB_BYTES:
        # Small ragged size: single (1, n) full-array block; no pad, masked store is fine.
        flats = [a.reshape(1, n) for a in arrays]
        out = _single_block_call(kernel, out_dtype, flats, scalars)
        return out.reshape(shape)

    # Large ragged size: stream the lane-aligned bulk through the kernel, compute the
    # <=127-element tail with plain jnp.
    # TODO(synk): the slice + concatenate still re-streams the bulk once through HBM;
    # an in-kernel masked tail store would remove that last extra pass.
    bulk_n = (n // _MIN_LANES) * _MIN_LANES
    bulk_lanes = _pick_lanes(bulk_n)
    flats = [a.reshape(-1) for a in arrays]
    bulk = [f[:bulk_n].reshape(bulk_n // bulk_lanes, bulk_lanes) for f in flats]
    out_bulk = _slab_call(kernel, out_dtype, bulk, scalars).reshape(-1)
    scalar_vals = [s[0] for s in scalars]
    tails = [f[bulk_n:] for f in flats]
    out_tail = math_fn(*scalar_vals, *tails, out_dtype)
    return jnp.concatenate([out_bulk, out_tail]).reshape(shape)


# ---------------- wrapper ----------------

def _scalar_out_dtype(tensor_dtype, other_dtype):
    # PyTorch: other.item() is a weak Python scalar -> a floating tensor keeps its dtype;
    # an integer tensor with a float scalar promotes to the default float.
    t = jnp.dtype(tensor_dtype)
    o = jnp.dtype(other_dtype)
    if jnp.issubdtype(t, jnp.floating):
        return t
    if jnp.issubdtype(o, jnp.floating):
        return jnp.dtype(jnp.float32)
    return t


def simple_rsub_model(tensor, other):
    """Pallas implementation of SimpleRsubModel.forward."""
    tensor = jnp.asarray(tensor)
    other = jnp.asarray(other)

    if other.ndim == 0:
        # scalar branch: other.item() - tensor*tensor
        out_dtype = _scalar_out_dtype(tensor.dtype, other.dtype)
        return _run_elementwise(_rsub_scalar_kernel, _scalar_math, out_dtype,
                                [tensor], scalars=[_smem_scalar(other)])

    # tensor branch: third = other - tensor ; return third - third
    out_shape = jnp.broadcast_shapes(tensor.shape, other.shape)
    out_dtype = jnp.result_type(tensor.dtype, other.dtype)

    if tensor.shape == other.shape:
        out = _run_elementwise(_rsub_tensor_kernel, _tensor_math, out_dtype,
                               [tensor, other])
        return out.reshape(out_shape)

    if other.size == 1:
        # single-element operand stays in SMEM; no full-size materialization in HBM.
        out = _run_elementwise(_rsub_tensor_scalar_kernel, _tensor_scalar_math,
                               out_dtype, [tensor], scalars=[_smem_scalar(other)])
        return out.reshape(out_shape)

    if tensor.size == 1:
        out = _run_elementwise(_rsub_tensor_scalar_kernel, _tensor_scalar_math,
                               out_dtype, [other], scalars=[_smem_scalar(tensor)])
        return out.reshape(out_shape)

    # TODO(synk): express general (1,N)->(M,N)-style broadcasts via the BlockSpec
    # index_map instead of materializing both operands at full size in HBM.
    t = jnp.broadcast_to(tensor, out_shape)
    o = jnp.broadcast_to(other, out_shape)
    return _run_elementwise(_rsub_tensor_kernel, _tensor_math, out_dtype, [t, o])


# ---------------- main ----------------

if __name__ == "__main__":
    key = jax.random.PRNGKey(0)
    k1, k2, k3 = jax.random.split(key, 3)

    # 1) tensor-tensor branch, small aligned shape -> single-block fast path
    x = jax.random.normal(k1, (2, 4, 16, 16), dtype=jnp.float32)
    other_t = jax.random.normal(k2, (2, 4, 16, 16), dtype=jnp.float32)
    out_t = simple_rsub_model(x, other_t)
    jax.block_until_ready(out_t)
    ref_t = (other_t - x) - (other_t - x)   # zeros
    assert out_t.shape == x.shape and out_t.dtype == x.dtype
    assert jnp.allclose(out_t, ref_t, atol=1e-6), "tensor-branch mismatch"

    # 2) scalar branch, small aligned shape
    other_s = jax.random.normal(k3, (), dtype=jnp.float32)
    out_s = simple_rsub_model(x, other_s)
    jax.block_until_ready(out_s)
    assert out_s.shape == x.shape
    assert jnp.allclose(out_s, other_s - x * x, atol=1e-5), "scalar-branch mismatch"

    # 3) scalar branch, ragged (non-128-divisible) shape -> (1, n) full-block path, no pad
    xr = jax.random.normal(k1, (3, 5, 7), dtype=jnp.float32)
    out_r = simple_rsub_model(xr, other_s)
    jax.block_until_ready(out_r)
    assert out_r.shape == xr.shape
    assert jnp.allclose(out_r, other_s - xr * xr, atol=1e-5), "ragged scalar-branch mismatch"

    # 4) tensor branch with a size-1 "other" -> SMEM scalar path (no broadcast_to in HBM)
    other_1 = jax.random.normal(k2, (1, 1, 1, 1), dtype=jnp.float32)
    out_1 = simple_rsub_model(x, other_1)
    jax.block_until_ready(out_1)
    assert out_1.shape == x.shape
    assert jnp.allclose(out_1, jnp.zeros_like(x)), "size-1 broadcast mismatch"

    # 5) larger aligned inputs to exercise the gridded streaming path on every generation
    xb = jax.random.normal(k1, (16, 16, 128, 128), dtype=jnp.float32)   # 16 MiB / operand
    ob = jax.random.normal(k2, (16, 16, 128, 128), dtype=jnp.float32)
    out_b = simple_rsub_model(xb, ob)
    jax.block_until_ready(out_b)
    assert jnp.allclose(out_b, jnp.zeros_like(xb)), "tiled tensor-branch mismatch"

    out_bs = simple_rsub_model(xb, other_s)
    jax.block_until_ready(out_bs)
    assert jnp.allclose(out_bs, other_s - xb * xb, atol=1e-5), "tiled scalar-branch mismatch"

    print("KERNEL_OK")
</pallas_src>

<mosaic_0001>
module attributes {stable_mosaic.version = 11 : i64} {
  func.func @_rsub_tensor_kernel(%arg0: memref<2x1024xf32, #tpu.memory_space<vmem>>, %arg1: memref<2x1024xf32, #tpu.memory_space<vmem>>, %arg2: memref<2x1024xf32, #tpu.memory_space<vmem>>) attributes {dimension_semantics = [], scalar_prefetch = 0 : i64, scratch_operands = 0 : i64, tpu.core_type = #tpu.core_type<tc>} {
    %c0 = arith.constant 0 : index
    %c0_0 = arith.constant 0 : index
    %0 = vector.load %arg0[%c0, %c0_0] : memref<2x1024xf32, #tpu.memory_space<vmem>>, vector<2x1024xf32>
    %c0_1 = arith.constant 0 : index
    %c0_2 = arith.constant 0 : index
    %1 = vector.load %arg1[%c0_1, %c0_2] : memref<2x1024xf32, #tpu.memory_space<vmem>>, vector<2x1024xf32>
    %2 = arith.subf %1, %0 : vector<2x1024xf32>
    %3 = arith.subf %2, %2 : vector<2x1024xf32>
    %c0_3 = arith.constant 0 : index
    %c0_4 = arith.constant 0 : index
    %4 = vector.load %arg2[%c0_3, %c0_4] : memref<2x1024xf32, #tpu.memory_space<vmem>>, vector<2x1024xf32>
    tpu.vector_store %arg2[%c0_3, %c0_4], %3 {strides = array<i32>} : memref<2x1024xf32, #tpu.memory_space<vmem>>, vector<2x1024xf32>,
    return
  }
}

</mosaic_0001>

<bundles_post_ra>
// kernel: tpu_custom_call.1
= control target key start
LH: loop header
LB: loop body
LE: loop exit
PB: predicated region body
PF: predicated region fallthrough
CT: control target
= control target key end

     0   :  { %7 = vsyncpa [#allocation3], 0  ;;  %s158_s0 = inlined_call_operand.hbm [shape: f32[2,1024], index: 0, kind: input, shape index: {}]   ;;  %s159_s1 = inlined_call_operand.hbm [shape: f32[2,1024], index: 1, kind: input, shape index: {}]   ;;  %s160_s2 = inlined_call_operand.hbm [shape: f32[2,1024], index: 2, kind: output, shape index: {}]  }
   0x1   :  { %8 = vsyncpa [#allocation6], 0 }
   0x2   :  { %9 = vsyncpa [#allocation4], 0  ;;  %s131_s9 = smov [#allocation2]   ;;  %s132_s11 = smov [#allocation5]  }
   0x3   :  { %s16_s10 = sshll.u32 %s131_s9, 4  ;;  %s26_s12 = sshll.u32 %s132_s11, 4  ;;  %s17_s10 = int_to_ptr.vmem [resolvable:$true] %s16_s10  ;;  %s27_s12 = int_to_ptr.vmem [resolvable:$true] %s26_s12 }
   0x4   :  { %s73_s13 = scalar_lea.vmem %s17_s10, 256  ;;  %p78_p1 = scmp.lt.s32.totalorder %s17_s10, %s17_s10 }
   0x5   :  { %p74_p0 = scmp.ne.s32.totalorder %s17_s10, %s73_s13  ;;  %p79_p2 = scmp.lt.s32.totalorder %s73_s13, %s73_s13 }
   0x7   :  { %p80_p3 = por %p79_p2, %p78_p1 }
   0x9   :  { %p81_p4 = pnand %p80_p3, %p74_p0 }
   0xb   :  { %84 = shalt.err (!%p81_p4)
}
   0xc   :  { %19 = dma.hbm_to_vmem [thread:$0]  %s158_s0, 256, %s17_s10, [#allocation3]  }
   0xd   :  { %s93_s16 = scalar_lea.vmem %s27_s12, 256  ;;  %p98_p6 = scmp.lt.s32.totalorder %s27_s12, %s27_s12 }
   0xe   :  { %p94_p5 = scmp.ne.s32.totalorder %s27_s12, %s93_s16  ;;  %p99_p7 = scmp.lt.s32.totalorder %s93_s16, %s93_s16 }
  0x10   :  { %p100_p8 = por %p99_p7, %p98_p6 }
  0x12   :  { %p101_p9 = pnand %p100_p8, %p94_p5 }
  0x14   :  { %104 = shalt.err (!%p101_p9)
}
  0x15   :  { %29 = dma.hbm_to_vmem [thread:$0]  %s159_s1, 256, %s27_s12, [#allocation6]  }
  0x16   :  { %125 = dma.done.wait [#allocation3], 256  }
  0x17   :  { %126 = vsyncadd [#allocation3], 4294967040 }
  0x18   :  { %127 = dma.done.wait [#allocation6], 256  }
  0x19   :  { %128 = vsyncadd [#allocation6], 4294967040  ;;  %v36_v0 = vld [vmem:[#allocation2] sm:$0xff]  ;;  %v38_v1 = vld [vmem:[#allocation5] sm:$0xff]  ;;  %s133_s0 = smov [#allocation7]  }
  0x1a   :  { %v37_v2 = vld [vmem:[#allocation2 + $0x8] sm:$0xff]  ;;  %v40_v3 = vsub.f32 %v38_v1, %v36_v0  ;;  %v39_v4 = vld [vmem:[#allocation5 + $0x8] sm:$0xff]  ;;  %s52_s19 = sshll.u32 %s133_s0, 4  ;;  %s53_s19 = int_to_ptr.vmem [resolvable:$true] %s52_s19 }
  0x1b   :  { %v41_v5 = vsub.f32 %v39_v4, %v37_v2  ;;  %s105_s20 = scalar_lea.vmem %s53_s19, 256  ;;  %p110_p11 = scmp.lt.s32.totalorder %s53_s19, %s53_s19 }
  0x1c   :  { %v42_v6 = vsub.f32 %v40_v3, %v40_v3  ;;  %p106_p10 = scmp.ne.s32.totalorder %s53_s19, %s105_s20  ;;  %p111_p12 = scmp.lt.s32.totalorder %s105_s20, %s105_s20 }
  0x1d   :  { %v43_v7 = vsub.f32 %v41_v5, %v41_v5 }
  0x1e   :  { %44 = vst [vmem:[#allocation7] sm:$0xff] %v42_v6  ;;  %p112_p13 = por %p111_p12, %p110_p11 }
  0x1f   :  { %45 = vst [vmem:[#allocation7 + $0x8] sm:$0xff] %v43_v7 }
  0x20   :  { %p113_p0 = pnand %p112_p13, %p106_p10 }
  0x22   :  { %116 = shalt.err (!%p113_p0)
}
  0x23   :  { %55 = dma.vmem_to_hbm [thread:$0]  %s53_s19, 256, %s160_s2, [#allocation4]  }
  0x24   :  { %129 = dma.done.wait [#allocation4], 256  }
  0x25   :  { %130 = vsyncadd [#allocation4], 4294967040 }
  0x26   :  { %59 = vsyncpa [#allocation3], 1 }
  0x27   :  { %60 = vsyncpa [#allocation6], 1 }
  0x28   :  { %61 = vsyncpa [#allocation4], 1 }

</bundles_post_ra>
